<compile_context>
chip_gen: v7x
topology: tpu7x:2x2x1
jax: 0.10.0
libtpu: 0.0.40
codegen_flags: <defaults>
</compile_context>

<pallas_src>
import numpy as np
import jax
import jax.numpy as jnp
from jax.experimental import pallas as pl
from jax.experimental.pallas import tpu as pltpu

LANE = 128   # lane width of every packed tensor / the merged output
HALF = 64    # lane offset of the mask branch inside the packed activation


def _rup8(n):
    return -(-n // 8) * 8


# ----------------------------- Pallas kernel --------------------------------
def make_glvm_kernel(layout):
    """Build the fused encoder kernel, closed over static slab row offsets."""
    d_in = layout["d_in"]
    o_w1x, o_w1m = layout["w1x"], layout["w1m"]
    o_wh, o_vh, o_vxm, o_b = layout["wh"], layout["vh"], layout["vxm"], layout["bias"]

    def kernel(x_ref, m_ref, w_ref, out_ref):
        # static slices into the single packed parameter slab (zero runtime cost)
        def w(off, rows):
            return w_ref[off:off + rows, :]

        def b(i):
            return w_ref[o_b + i:o_b + i + 1, :]

        x = x_ref[...]                      # (B, d_in)
        m = m_ref[...]                      # (B, d_in)

        # layer 1: fused leading Linear pairs of input_embed / mask_embed stacks,
        # row-split so no concat is needed.  x-branch -> lanes [0:n_h),
        # m-branch -> lanes [HALF:HALF+h_m); all other lanes are exactly 0.
        xm1 = jnp.maximum(
            jnp.dot(x, w(o_w1x, d_in), preferred_element_type=jnp.float32)
            + jnp.dot(m, w(o_w1m, d_in), preferred_element_type=jnp.float32)
            + b(0), 0.0)

        # hidden layer: every Linear between the two ReLUs (ie_w2 / me_w2,
        # linear_mean_branch, mean_branch_transform[0:2]) folded host-side into Wh.
        h = jnp.maximum(
            jnp.dot(xm1, w(o_wh, LANE), preferred_element_type=jnp.float32)
            + b(1), 0.0)

        # merged heads: means -> lanes [0:L), log_vars -> lanes [L:2L).
        out_ref[...] = (
            jnp.dot(h, w(o_vh, LANE), preferred_element_type=jnp.float32)
            + jnp.dot(xm1, w(o_vxm, LANE), preferred_element_type=jnp.float32)
            + b(2))
        # (If a consumer wants reparameterized samples, exp(0.5*logvar) could be
        #  fused here on the otherwise-idle EUP slot.)

    return kernel


# --------------------- host-side fusion & packing (run once) ------------------
def fuse_and_pack_params(flat_params, input_size, latent_size):
    """Fuse every ReLU-free Linear chain, fold both concats into row-split weights,
    and pack everything into ONE zero-padded lane-dense (R, 128) f32 slab.
    Done in float64 so the fusion itself adds no rounding beyond the final f32 cast."""
    p = [np.asarray(a, dtype=np.float64) for a in flat_params]
    (me_w0, me_b0, me_w1, me_b1, me_w2, me_b2,
     ie_w0, ie_b0, ie_w1, ie_b1, ie_w2, ie_b2,
     mb_w, mb_b, vb_w, vb_b,
     mt_w0, mt_b0, mt_w1, mt_b1, mt_w2, mt_b2,
     lm_w, lm_b, lv_w, lv_b) = p

    d_in = input_size
    h_m = me_w0.shape[1]      # mask_embed_hidden
    n_h = ie_w0.shape[1]      # n_hidden
    L = latent_size
    # Lane-merged output + the "dead lanes stay 0 through ReLU" argument require:
    assert n_h <= HALF and h_m <= HALF, "branch widths must fit one lane half"
    assert 2 * L <= LANE, "merged (means | log_vars) output must fit 128 lanes"

    # ---- Linear∘Linear fusions (no ReLU in between) ----
    A_x, b_x1 = ie_w0 @ ie_w1, ie_b0 @ ie_w1 + ie_b1       # input embed, pre-ReLU
    A_m, b_m1 = me_w0 @ me_w1, me_b0 @ me_w1 + me_b1       # mask  embed, pre-ReLU

    mt01 = mt_w0 @ mt_w1                                   # (2*d_in, h_m)
    b_mt01 = mt_b0 @ mt_w1 + mt_b1
    mt01_x, mt01_m = mt01[:d_in], mt01[d_in:]

    # mean path hidden layer: fold linear_mean_branch and the post-ReLU embed
    # Linears (ie_w2 / me_w2) so the layer acts directly on the post-ReLU x1/m1.
    W5 = mb_w @ mt01_x
    b5 = mb_b @ mt01_x + b_mt01
    W_h_x = ie_w2 @ W5                                     # acts on x1
    W_h_m = me_w2 @ mt01_m                                 # acts on m1
    b_h = ie_b2 @ W5 + me_b2 @ mt01_m + b5

    # mean head: mean_branch_transform[-1] folded into linear_means
    V_mean = mt_w2 @ lm_w                                  # (h_m, L), acts on h
    b_mean = mt_b2 @ lm_w + lm_b

    # log-var head: linear_log_var_branch + concat + linear_log_var, with the
    # post-ReLU embed Linears folded in (acts directly on x1 / m1).
    lv_x, lv_m = lv_w[:d_in], lv_w[d_in:]
    V_lv_x = ie_w2 @ vb_w @ lv_x                           # acts on x1
    V_lv_m = me_w2 @ lv_m                                  # acts on m1
    b_lv = ie_b2 @ vb_w @ lv_x + vb_b @ lv_x + me_b2 @ lv_m + lv_b

    # ---- pack everything into a single (R, 128) slab ----
    o_w1x = 0
    o_w1m = o_w1x + _rup8(d_in)
    o_wh = o_w1m + _rup8(d_in)
    o_vh = o_wh + LANE
    o_vxm = o_vh + LANE
    o_b = o_vxm + LANE
    rows = o_b + 8

    slab = np.zeros((rows, LANE), np.float64)
    # layer-1 row-split weights
    slab[o_w1x:o_w1x + d_in, 0:n_h] = A_x
    slab[o_w1m:o_w1m + d_in, HALF:HALF + h_m] = A_m
    # hidden-layer weight (output in lanes [0:h_m))
    slab[o_wh + 0:o_wh + n_h, 0:h_m] = W_h_x
    slab[o_wh + HALF:o_wh + HALF + h_m, 0:h_m] = W_h_m
    # output heads (means in cols [0:L), log_vars in cols [L:2L))
    slab[o_vh + 0:o_vh + h_m, 0:L] = V_mean
    slab[o_vxm + 0:o_vxm + n_h, L:2 * L] = V_lv_x
    slab[o_vxm + HALF:o_vxm + HALF + h_m, L:2 * L] = V_lv_m
    # biases (one row each); padded lanes are exactly 0 -> ReLU(0)=0 keeps dead
    # lanes zero through every fused layer.
    slab[o_b + 0, 0:n_h] = b_x1[0]
    slab[o_b + 0, HALF:HALF + h_m] = b_m1[0]
    slab[o_b + 1, 0:h_m] = b_h[0]
    slab[o_b + 2, 0:L] = b_mean[0]
    slab[o_b + 2, L:2 * L] = b_lv[0]

    layout = dict(d_in=d_in, w1x=o_w1x, w1m=o_w1m, wh=o_wh, vh=o_vh,
                  vxm=o_vxm, bias=o_b, rows=rows)
    packed = dict(slab=jnp.asarray(slab, jnp.float32), layout=layout,
                  input_size=d_in, latent_size=L)
    return packed


# ------------------------------ wrappers --------------------------------------
def glvm_encoder_merged(x, m, packed):
    """Returns the merged (B, 128) slab: means in lanes [0:L), log_vars in [L:2L)."""
    if x.dtype != jnp.float32:
        x = x.astype(jnp.float32)
    if m.dtype != jnp.float32:
        m = m.astype(jnp.float32)
    B = x.shape[0]
    Bp = _rup8(B)
    if Bp != B:   # keep the output store full-vreg (unmasked) — pad batch if needed
        x = jnp.pad(x, ((0, Bp - B), (0, 0)))
        m = jnp.pad(m, ((0, Bp - B), (0, 0)))

    vmem = pl.BlockSpec(memory_space=pltpu.MemorySpace.VMEM)
    kernel = make_glvm_kernel(packed["layout"])
    out = pl.pallas_call(
        kernel,
        out_shape=jax.ShapeDtypeStruct((Bp, LANE), jnp.float32),
        in_specs=[vmem, vmem, vmem],
        out_specs=vmem,
    )(x, m, packed["slab"])
    return out[:B] if Bp != B else out


def glvm_encoder(x, m, packed):
    """Drop-in (means, log_vars) API.  Prefer glvm_encoder_merged + downstream
    consumption of the merged slab to avoid the two tiny post-call slice ops."""
    L = packed["latent_size"]
    out = glvm_encoder_merged(x, m, packed)
    return out[:, :L], out[:, L:2 * L]


# --------------------------- parameter setup ---------------------------------
def init_linear(key, din, dout):
    """PyTorch nn.Linear default init, stored as (in, out) so y = x @ W + b."""
    k_w, k_b = jax.random.split(key)
    bound = 1.0 / np.sqrt(din)
    w = jax.random.uniform(k_w, (din, dout), jnp.float32, -bound, bound)
    b = jax.random.uniform(k_b, (1, dout), jnp.float32, -bound, bound)
    return w, b


def make_params(key, input_size, latent_size, n_hidden):
    mask_embed_hidden = int(np.round(input_size / 2))
    input_size_concat = 2 * input_size
    layer_dims = [
        # mask_embed_advanced
        (input_size, mask_embed_hidden),
        (mask_embed_hidden, mask_embed_hidden),
        (mask_embed_hidden, input_size),
        # input_embed_advanced
        (input_size, n_hidden),
        (n_hidden, n_hidden),
        (n_hidden, input_size),
        # linear_mean_branch, linear_log_var_branch
        (input_size, input_size),
        (input_size, input_size),
        # mean_branch_transform
        (input_size_concat, mask_embed_hidden),
        (mask_embed_hidden, mask_embed_hidden),
        (mask_embed_hidden, input_size_concat),
        # linear_means, linear_log_var
        (input_size_concat, latent_size),
        (input_size_concat, latent_size),
    ]
    keys = jax.random.split(key, len(layer_dims))
    flat = []
    for k, (din, dout) in zip(keys, layer_dims):
        w, b = init_linear(k, din, dout)
        flat.extend([w, b])
    return flat


# --------------------------- reference (numpy, float64) ------------------------
def reference_forward(x, m, params):
    """Direct, unfused translation of the PyTorch forward (concat path)."""
    p = [np.asarray(a, dtype=np.float64) for a in params]
    (me_w0, me_b0, me_w1, me_b1, me_w2, me_b2,
     ie_w0, ie_b0, ie_w1, ie_b1, ie_w2, ie_b2,
     mb_w, mb_b, vb_w, vb_b,
     mt_w0, mt_b0, mt_w1, mt_b1, mt_w2, mt_b2,
     lm_w, lm_b, lv_w, lv_b) = p
    x = np.asarray(x, np.float64)
    m = np.asarray(m, np.float64)

    def lin(a, w, b):
        return a @ w + b

    m = lin(lin(m, me_w0, me_b0), me_w1, me_b1)
    m = lin(np.maximum(m, 0.0), me_w2, me_b2)
    x = lin(lin(x, ie_w0, ie_b0), ie_w1, ie_b1)
    x = lin(np.maximum(x, 0.0), ie_w2, ie_b2)
    mx = lin(x, mb_w, mb_b)
    varx = lin(x, vb_w, vb_b)
    mx = np.concatenate([mx, m], axis=1)
    varx = np.concatenate([varx, m], axis=1)
    mx = lin(lin(mx, mt_w0, mt_b0), mt_w1, mt_b1)
    mx = lin(np.maximum(mx, 0.0), mt_w2, mt_b2)
    return lin(mx, lm_w, lm_b), lin(varx, lv_w, lv_b)


# --------------------------------- main ---------------------------------------
if __name__ == "__main__":
    input_size = 16
    latent_size = 4
    n_hidden = 10
    batch = 8

    key = jax.random.PRNGKey(0)
    k_x, k_m, k_p = jax.random.split(key, 3)

    x = jax.random.normal(k_x, (batch, input_size), jnp.float32)
    # binary mask {0, 1}, as in a masked-VAE setting (pass_mask=True)
    m = (jax.random.uniform(k_m, (batch, input_size)) > 0.5).astype(jnp.float32)

    params = make_params(k_p, input_size, latent_size, n_hidden)

    # host-side fusion / packing happens ONCE per parameter set
    packed = fuse_and_pack_params(params, input_size, latent_size)

    merged = glvm_encoder_merged(x, m, packed)
    jax.block_until_ready(merged)

    # consume the merged slab and split host-side (no extra device ops)
    merged_np = np.asarray(merged)
    means = merged_np[:, :latent_size]
    log_vars = merged_np[:, latent_size:2 * latent_size]

    ref_means, ref_log_vars = reference_forward(x, m, params)
    # host-side algebraic fusion reassociates sums and the MXU f32 matmuls are not
    # bit-exact vs float64 -> compare with tolerance, not exactly.
    np.testing.assert_allclose(means, ref_means, rtol=1e-3, atol=1e-4)
    np.testing.assert_allclose(log_vars, ref_log_vars, rtol=1e-3, atol=1e-4)

    print("KERNEL_OK")
</pallas_src>

<mosaic_0001>
module attributes {stable_mosaic.version = 11 : i64} {
  func.func @kernel(%arg0: memref<8x16xf32, #tpu.memory_space<vmem>>, %arg1: memref<8x16xf32, #tpu.memory_space<vmem>>, %arg2: memref<424x128xf32, #tpu.memory_space<vmem>>, %arg3: memref<8x128xf32, #tpu.memory_space<vmem>>) attributes {dimension_semantics = [], scalar_prefetch = 0 : i64, scratch_operands = 0 : i64, tpu.core_type = #tpu.core_type<tc>} {
    %c0 = arith.constant 0 : index
    %c0_0 = arith.constant 0 : index
    %0 = vector.load %arg0[%c0, %c0_0] : memref<8x16xf32, #tpu.memory_space<vmem>>, vector<8x16xf32>
    %c0_1 = arith.constant 0 : index
    %c0_2 = arith.constant 0 : index
    %1 = vector.load %arg1[%c0_1, %c0_2] : memref<8x16xf32, #tpu.memory_space<vmem>>, vector<8x16xf32>
    %c0_3 = arith.constant 0 : index
    %c0_4 = arith.constant 0 : index
    %2 = vector.load %arg2[%c0_3, %c0_4] : memref<424x128xf32, #tpu.memory_space<vmem>>, vector<16x128xf32>
    %cst = arith.constant dense<0.000000e+00> : vector<8x128xf32>
    %3 = tpu.matmul %0, %2, %cst {dimension_numbers = #tpu.dot_dimension_numbers<[1], [0], [0], [1], [0, 0, 1, 1], [], []>} : vector<8x16xf32>, vector<16x128xf32>, vector<8x128xf32> -> vector<8x128xf32>
    %c16 = arith.constant 16 : index
    %c0_5 = arith.constant 0 : index
    %4 = vector.load %arg2[%c16, %c0_5] : memref<424x128xf32, #tpu.memory_space<vmem>>, vector<16x128xf32>
    %cst_6 = arith.constant dense<0.000000e+00> : vector<8x128xf32>
    %5 = tpu.matmul %1, %4, %cst_6 {dimension_numbers = #tpu.dot_dimension_numbers<[1], [0], [0], [1], [0, 0, 1, 1], [], []>} : vector<8x16xf32>, vector<16x128xf32>, vector<8x128xf32> -> vector<8x128xf32>
    %6 = arith.addf %3, %5 : vector<8x128xf32>
    %c416 = arith.constant 416 : index
    %c0_7 = arith.constant 0 : index
    %7 = vector.load %arg2[%c416, %c0_7] : memref<424x128xf32, #tpu.memory_space<vmem>>, vector<1x128xf32>
    %8 = vector.broadcast %7 : vector<1x128xf32> to vector<8x128xf32>
    %9 = arith.addf %6, %8 : vector<8x128xf32>
    %cst_8 = arith.constant 0.000000e+00 : f32
    %10 = vector.broadcast %cst_8 : f32 to vector<8x128xf32>
    %11 = arith.maximumf %9, %10 : vector<8x128xf32>
    %c32 = arith.constant 32 : index
    %c0_9 = arith.constant 0 : index
    %12 = vector.load %arg2[%c32, %c0_9] : memref<424x128xf32, #tpu.memory_space<vmem>>, vector<128x128xf32>
    %cst_10 = arith.constant dense<0.000000e+00> : vector<8x128xf32>
    %13 = tpu.matmul %11, %12, %cst_10 {dimension_numbers = #tpu.dot_dimension_numbers<[1], [0], [0], [1], [0, 0, 1, 1], [], []>} : vector<8x128xf32>, vector<128x128xf32>, vector<8x128xf32> -> vector<8x128xf32>
    %c417 = arith.constant 417 : index
    %c0_11 = arith.constant 0 : index
    %14 = vector.load %arg2[%c417, %c0_11] : memref<424x128xf32, #tpu.memory_space<vmem>>, vector<1x128xf32>
    %15 = vector.broadcast %14 : vector<1x128xf32> to vector<8x128xf32>
    %16 = arith.addf %13, %15 : vector<8x128xf32>
    %cst_12 = arith.constant 0.000000e+00 : f32
    %17 = vector.broadcast %cst_12 : f32 to vector<8x128xf32>
    %18 = arith.maximumf %16, %17 : vector<8x128xf32>
    %c160 = arith.constant 160 : index
    %c0_13 = arith.constant 0 : index
    %19 = vector.load %arg2[%c160, %c0_13] : memref<424x128xf32, #tpu.memory_space<vmem>>, vector<128x128xf32>
    %cst_14 = arith.constant dense<0.000000e+00> : vector<8x128xf32>
    %20 = tpu.matmul %18, %19, %cst_14 {dimension_numbers = #tpu.dot_dimension_numbers<[1], [0], [0], [1], [0, 0, 1, 1], [], []>} : vector<8x128xf32>, vector<128x128xf32>, vector<8x128xf32> -> vector<8x128xf32>
    %c288 = arith.constant 288 : index
    %c0_15 = arith.constant 0 : index
    %21 = vector.load %arg2[%c288, %c0_15] : memref<424x128xf32, #tpu.memory_space<vmem>>, vector<128x128xf32>
    %cst_16 = arith.constant dense<0.000000e+00> : vector<8x128xf32>
    %22 = tpu.matmul %11, %21, %cst_16 {dimension_numbers = #tpu.dot_dimension_numbers<[1], [0], [0], [1], [0, 0, 1, 1], [], []>} : vector<8x128xf32>, vector<128x128xf32>, vector<8x128xf32> -> vector<8x128xf32>
    %23 = arith.addf %20, %22 : vector<8x128xf32>
    %c418 = arith.constant 418 : index
    %c0_17 = arith.constant 0 : index
    %24 = vector.load %arg2[%c418, %c0_17] : memref<424x128xf32, #tpu.memory_space<vmem>>, vector<1x128xf32>
    %25 = vector.broadcast %24 : vector<1x128xf32> to vector<8x128xf32>
    %26 = arith.addf %23, %25 : vector<8x128xf32>
    %c0_18 = arith.constant 0 : index
    %c0_19 = arith.constant 0 : index
    %27 = vector.load %arg3[%c0_18, %c0_19] : memref<8x128xf32, #tpu.memory_space<vmem>>, vector<8x128xf32>
    tpu.vector_store %arg3[%c0_18, %c0_19], %26 {strides = array<i32>} : memref<8x128xf32, #tpu.memory_space<vmem>>, vector<8x128xf32>,
    return
  }
}

</mosaic_0001>

<bundles_post_ra>
// kernel: tpu_custom_call.1
= control target key start
LH: loop header
LB: loop body
LE: loop exit
PB: predicated region body
PF: predicated region fallthrough
CT: control target
= control target key end

     0   :  { %8 = vsyncpa [#allocation3], 0  ;;  %s976_s0 = inlined_call_operand.hbm [shape: f32[8,16], index: 0, kind: input, shape index: {}]   ;;  %s977_s1 = inlined_call_operand.hbm [shape: f32[8,16], index: 1, kind: input, shape index: {}]   ;;  %s978_s2 = inlined_call_operand.hbm [shape: f32[424,128], index: 2, kind: input, shape index: {}]   ;;  %s979_s3 = inlined_call_operand.hbm [shape: f32[8,128], index: 3, kind: output, shape index: {}]  }
   0x1   :  { %9 = vsyncpa [#allocation6], 0 }
   0x2   :  { %10 = vsyncpa [#allocation4], 0  ;;  %s861_s12 = smov [#allocation5]   ;;  %s862_s14 = smov [#allocation2]  }
   0x3   :  { %s27_s13 = sshll.u32 %s861_s12, 4  ;;  %s17_s15 = sshll.u32 %s862_s14, 4  ;;  %s28_s13 = int_to_ptr.vmem [resolvable:$true] %s27_s13  ;;  %s18_s15 = int_to_ptr.vmem [resolvable:$true] %s17_s15 }
   0x4   :  { %s767_s18 = scalar_lea.hbm %s977_s1, 128 }
   0x5   :  { %p768_p0 = scmp.ne.s32.totalorder %s977_s1, %s767_s18  ;;  %p771_p1 = scmp.lt.u32.totalorder %s767_s18, %s977_s1 }
   0x7   :  { %p773_p2 = pnand %p771_p1, %p768_p0 }
   0x9   :  { %776 = shalt.err (!%p773_p2)
}
   0xa   :  { %s777_s23 = scalar_lea.vmem %s28_s13, 128  ;;  %p782_p4 = scmp.lt.s32.totalorder %s28_s13, %s28_s13 }
   0xb   :  { %p778_p3 = scmp.ne.s32.totalorder %s28_s13, %s777_s23  ;;  %p783_p5 = scmp.lt.s32.totalorder %s777_s23, %s777_s23 }
   0xd   :  { %p784_p6 = por %p783_p5, %p782_p4 }
   0xf   :  { %p785_p7 = pnand %p784_p6, %p778_p3 }
  0x11   :  { %788 = shalt.err (!%p785_p7)
}
  0x12   :  { %30 = dma.hbm_to_vmem [thread:$0]  %s977_s1, 128, %s28_s13, [#allocation6]  }
  0x13   :  { %s789_s28 = scalar_lea.hbm %s976_s0, 128 }
  0x14   :  { %p790_p8 = scmp.ne.s32.totalorder %s976_s0, %s789_s28  ;;  %p793_p9 = scmp.lt.u32.totalorder %s789_s28, %s976_s0 }
  0x16   :  { %p795_p10 = pnand %p793_p9, %p790_p8 }
  0x18   :  { %798 = shalt.err (!%p795_p10)
}
  0x19   :  { %s799_s6 = scalar_lea.vmem %s18_s15, 128  ;;  %p804_p12 = scmp.lt.s32.totalorder %s18_s15, %s18_s15 }
  0x1a   :  { %p800_p11 = scmp.ne.s32.totalorder %s18_s15, %s799_s6  ;;  %p805_p13 = scmp.lt.s32.totalorder %s799_s6, %s799_s6 }
  0x1c   :  { %p806_p0 = por %p805_p13, %p804_p12 }
  0x1e   :  { %p807_p1 = pnand %p806_p0, %p800_p11 }
  0x20   :  { %810 = shalt.err (!%p807_p1)
}
  0x21   :  { %20 = dma.hbm_to_vmem [thread:$0]  %s976_s0, 128, %s18_s15, [#allocation3]  }
  0x22   :  { %s863_s8 = smov [#allocation7]   ;;  %s811_s12 = scalar_lea.hbm %s978_s2, 6784 }
  0x23   :  { %s36_s9 = sshll.u32 %s863_s8, 4  ;;  %p812_p2 = scmp.ne.s32.totalorder %s978_s2, %s811_s12  ;;  %s37_s9 = int_to_ptr.vmem [resolvable:$true] %s36_s9 }
  0x24   :  { %p815_p3 = scmp.lt.u32.totalorder %s811_s12, %s978_s2 }
  0x26   :  { %p817_p4 = pnand %p815_p3, %p812_p2 }
  0x28   :  { %820 = shalt.err (!%p817_p4)
}
  0x29   :  { %s821_s18 = scalar_lea.vmem %s37_s9, 6784  ;;  %p826_p6 = scmp.lt.s32.totalorder %s37_s9, %s37_s9 }
  0x2a   :  { %p822_p5 = scmp.ne.s32.totalorder %s37_s9, %s821_s18  ;;  %p827_p7 = scmp.lt.s32.totalorder %s821_s18, %s821_s18 }
  0x2c   :  { %p828_p8 = por %p827_p7, %p826_p6 }
  0x2e   :  { %p829_p9 = pnand %p828_p8, %p822_p5 }
  0x30   :  { %832 = shalt.err (!%p829_p9)
}
  0x31   :  { %s864_s0 = smov 128   ;;  %s865_s15 = smov 8  }
  0x32   :  { %42 = dma.hbm_to_vmem [thread:$0]  %s978_s2, 6784, %s37_s9, [#allocation6], %s864_s0, %s864_s0, %s865_s15  }
  0x33   :  { %855 = dma.done.wait [#allocation3], 128  }
  0x34   :  { %856 = vsyncadd [#allocation3], 4294967168 }
  0x35   :  { %857 = dma.done.wait [#allocation6], 6912  }
  0x36   :  { %858 = vsyncadd [#allocation6], 4294960384  ;;  %v866_v0 = vmov 0.0|0.0   ;;  %vm867_vm0 = vmmov 0   ;;  %v868_v1 = vmov 0.0   ;;  %v56_v2 = vld [vmem:[#allocation7 + $0x10] sm:$0xff] }
  0x37   :  { %680 = vmatprep.subr.bf16.mxu1 %v866_v0  ;;  %565 = vmatprep.mubr.msk.f32.mxu1 %vm867_vm0, %v868_v1  ;;  %v57_v3 = vld [vmem:[#allocation7 + $0x18] sm:$0xff]  ;;  %v54_v5 = vld [vmem:[#allocation7] sm:$0xff]  ;;  %v55_v6 = vld [vmem:[#allocation7 + $0x8] sm:$0xff]  ;;  %vm58_vm1 = vcmask 130048   ;;  %s869_s2 = smov [#allocation8]  }
  0x38   :  { %686 = vmatprep.subr.bf16.mxu0 %v866_v0  ;;  %607 = vmatprep.mubr.msk.f32.mxu0 %vm867_vm0, %v868_v1  ;;  %v681_v4 = vpack.c.bf16 %v57_v3, %v56_v2  ;;  %v212_v7 = vld [vmem:[#allocation7 + $0x20] sm:$0xff]  ;;  %v213_v8 = vld [vmem:[#allocation7 + $0x28] sm:$0xff]  ;;  %v53_v9 = vld [vmem:[#allocation5] sm:$0xff]  ;;  %v684_v10 = vpack.c.bf16 %v55_v6, %v54_v5  ;;  %s489_s21 = sshll.u32 %s869_s2, 4  ;;  %s490_s21 = int_to_ptr.vmem [resolvable:$true] %s489_s21 }
  0x39   :  { %v687_v11 = vpack.c.bf16 %v213_v8, %v212_v7  ;;  %v214_v12 = vld [vmem:[#allocation7 + $0x30] sm:$0xff]  ;;  %v215_v13 = vld [vmem:[#allocation7 + $0x38] sm:$0xff]  ;;  %v320_v14 = vld [vmem:[#allocation7 + $0x120] sm:$0xff]  ;;  %s833_s22 = scalar_lea.vmem %s490_s21, 128  ;;  %p838_p11 = scmp.lt.s32.totalorder %s490_s21, %s490_s21 }
  0x3a   :  { %682 = vmatpush3.bf16.msra.mxu1 %v681_v4  ;;  %v321_v15 = vld [vmem:[#allocation7 + $0x128] sm:$0xff]  ;;  %v690_v16 = vpack.c.bf16 %v215_v13, %v214_v12  ;;  %v216_v17 = vld [vmem:[#allocation7 + $0x40] sm:$0xff]  ;;  %v52_v19 = vld [vmem:[#allocation2] sm:$0xff]  ;;  %p834_p10 = scmp.ne.s32.totalorder %s490_s21, %s833_s22  ;;  %p839_p12 = scmp.lt.s32.totalorder %s833_s22, %s833_s22 }
  0x3b   :  { %683 = vmatprep.subr.bf16.mxu1 %v866_v0  ;;  %688 = vmatpush3.bf16.msra.mxu0 %v687_v11  ;;  %v217_v18 = vld [vmem:[#allocation7 + $0x48] sm:$0xff]  ;;  %v711_v20 = vpack.c.bf16 %v321_v15, %v320_v14  ;;  %v322_v21 = vld [vmem:[#allocation7 + $0x130] sm:$0xff]  ;;  %v323_v22 = vld [vmem:[#allocation7 + $0x138] sm:$0xff] }
  0x3c   :  { %689 = vmatprep.subr.bf16.mxu0 %v866_v0  ;;  %v693_v23 = vpack.c.bf16 %v217_v18, %v216_v17  ;;  %v218_v24 = vld [vmem:[#allocation7 + $0x50] sm:$0xff]  ;;  %v219_v25 = vld [vmem:[#allocation7 + $0x58] sm:$0xff]  ;;  %v714_v26 = vpack.c.bf16 %v323_v22, %v322_v21  ;;  %v324_v27 = vld [vmem:[#allocation7 + $0x140] sm:$0xff]  ;;  %p840_p13 = por %p839_p12, %p838_p11 }
  0x3d   :  { %566 = vmatmul.mubr.msk.f32.vlgmr.msra.gmra.mrb[0].mxu1 %vm58_vm1, %v53_v9  ;;  %v325_v28 = vld [vmem:[#allocation7 + $0x148] sm:$0xff]  ;;  %v696_v29 = vpack.c.bf16 %v219_v25, %v218_v24  ;;  %v220_v30 = vld [vmem:[#allocation7 + $0x60] sm:$0xff]  ;;  %v326_v33 = vld [vmem:[#allocation7 + $0x150] sm:$0xff] }
  0x3e   :  { %685 = vmatpush3.bf16.msra.mxu1 %v684_v10  ;;  %572 = vmatprep.mubr.msk.f32.mxu1 %vm867_vm0, %v868_v1  ;;  %v221_v31 = vld [vmem:[#allocation7 + $0x68] sm:$0xff]  ;;  %v717_v32 = vpack.c.bf16 %v325_v28, %v324_v27  ;;  %v327_v34 = vld [vmem:[#allocation7 + $0x158] sm:$0xff]  ;;  %v328_v37 = vld [vmem:[#allocation7 + $0x160] sm:$0xff]  ;;  %p841_p0 = pnand %p840_p13, %p834_p10 }
  0x3f   :  { %710 = vmatprep.subr.bf16.mxu1 %v866_v0  ;;  %691 = vmatpush3.bf16.msra.mxu0 %v690_v16  ;;  %v699_v35 = vpack.c.bf16 %v221_v31, %v220_v30  ;;  %v720_v36 = vpack.c.bf16 %v327_v34, %v326_v33  ;;  %v329_v38 = vld [vmem:[#allocation7 + $0x168] sm:$0xff]  ;;  %v222_v40 = vld [vmem:[#allocation7 + $0x70] sm:$0xff]  ;;  %v223_v41 = vld [vmem:[#allocation7 + $0x78] sm:$0xff] }
  0x40   :  { %692 = vmatprep.subr.bf16.mxu0 %v866_v0  ;;  %v723_v39 = vpack.c.bf16 %v329_v38, %v328_v37  ;;  %v330_v42 = vld [vmem:[#allocation7 + $0x170] sm:$0xff]  ;;  %v702_v43 = vpack.c.bf16 %v223_v41, %v222_v40  ;;  %v331_v44 = vld [vmem:[#allocation7 + $0x178] sm:$0xff]  ;;  %v224_v46 = vld [vmem:[#allocation7 + $0x80] sm:$0xff] }
  0x41   :  { %573 = vmatmul.mubr.msk.f32.vlgmr.msra.gmra.mrb[2].mxu1 %vm58_vm1, %v52_v19  ;;  %v726_v45 = vpack.c.bf16 %v331_v44, %v330_v42  ;;  %v225_v47 = vld [vmem:[#allocation7 + $0x88] sm:$0xff]  ;;  %v332_v48 = vld [vmem:[#allocation7 + $0x180] sm:$0xff]  ;;  %v226_v52 = vld [vmem:[#allocation7 + $0x90] sm:$0xff] }
  0x42   :  { %712 = vmatpush3.bf16.msra.mxu1 %v711_v20  ;;  %642 = vmatprep.mubr.msk.f32.mxu1 %vm867_vm0, %v868_v1  ;;  %v705_v49 = vpack.c.bf16 %v225_v47, %v224_v46  ;;  %v333_v50 = vld [vmem:[#allocation7 + $0x188] sm:$0xff]  ;;  %v227_v53 = vld [vmem:[#allocation7 + $0x98] sm:$0xff]  ;;  %v334_v55 = vld [vmem:[#allocation7 + $0x190] sm:$0xff] }
  0x43   :  { %713 = vmatprep.subr.bf16.mxu1 %v866_v0  ;;  %694 = vmatpush3.bf16.msra.mxu0 %v693_v23  ;;  %v729_v51 = vpack.c.bf16 %v333_v50, %v332_v48  ;;  %v708_v54 = vpack.c.bf16 %v227_v53, %v226_v52  ;;  %v335_v56 = vld [vmem:[#allocation7 + $0x198] sm:$0xff]  ;;  %v501_v61 = vld [vmem:[#allocation7 + $0x1a0] ss:$0 sm:$0xff]  ;;  %v305_v3 = vld [vmem:[#allocation7 + $0xa8] sm:$0xff] }
  0x44   :  { %695 = vmatprep.subr.bf16.mxu0 %v866_v0  ;;  %v732_v57 = vpack.c.bf16 %v335_v56, %v334_v55  ;;  %v304_v2 = vld [vmem:[#allocation7 + $0xa0] sm:$0xff]  ;;  %v306_v7 = vld [vmem:[#allocation7 + $0xb0] sm:$0xff]  ;;  %v307_v8 = vld [vmem:[#allocation7 + $0xb8] sm:$0xff] }
  0x45   :  { %v735_v5 = vpack.c.bf16 %v305_v3, %v304_v2  ;;  %v738_v9 = vpack.c.bf16 %v307_v8, %v306_v7  ;;  %v308_v10 = vld [vmem:[#allocation7 + $0xc0] sm:$0xff]  ;;  %v309_v11 = vld [vmem:[#allocation7 + $0xc8] sm:$0xff]  ;;  %v310_v13 = vld [vmem:[#allocation7 + $0xd0] sm:$0xff] }
  0x46   :  { %715 = vmatpush3.bf16.msra.mxu1 %v714_v26  ;;  %v741_v12 = vpack.c.bf16 %v309_v11, %v308_v10  ;;  %v311_v14 = vld [vmem:[#allocation7 + $0xd8] sm:$0xff]  ;;  %v312_v16 = vld [vmem:[#allocation7 + $0xe0] sm:$0xff]  ;;  %v313_v17 = vld [vmem:[#allocation7 + $0xe8] sm:$0xff] }
  0x47   :  { %716 = vmatprep.subr.bf16.mxu1 %v866_v0  ;;  %697 = vmatpush3.bf16.msra.mxu0 %v696_v29  ;;  %v744_v15 = vpack.c.bf16 %v311_v14, %v310_v13  ;;  %v747_v18 = vpack.c.bf16 %v313_v17, %v312_v16  ;;  %v315_v19 = vld [vmem:[#allocation7 + $0xf8] sm:$0xff]  ;;  %v316_v21 = vld [vmem:[#allocation7 + $0x100] sm:$0xff]  ;;  %v317_v22 = vld [vmem:[#allocation7 + $0x108] sm:$0xff] }
  0x48   :  { %698 = vmatprep.subr.bf16.mxu0 %v866_v0  ;;  %v753_v23 = vpack.c.bf16 %v317_v22, %v316_v21  ;;  %v318_v24 = vld [vmem:[#allocation7 + $0x110] sm:$0xff]  ;;  %v319_v25 = vld [vmem:[#allocation7 + $0x118] sm:$0xff]  ;;  %v502_v27 = vld [vmem:[#allocation7 + $0x1a1] ss:$0 sm:$0xff] }
  0x49   :  { %v756_v26 = vpack.c.bf16 %v319_v25, %v318_v24 }
  0x4a   :  { %718 = vmatpush3.bf16.msra.mxu1 %v717_v32 }
  0x4b   :  { %719 = vmatprep.subr.bf16.mxu1 %v866_v0  ;;  %700 = vmatpush3.bf16.msra.mxu0 %v699_v35  ;;  %v503_v35 = vld [vmem:[#allocation7 + $0x1a2] ss:$0 sm:$0xff] }
  0x4c   :  { %701 = vmatprep.subr.bf16.mxu0 %v866_v0 }
  0x4e   :  { %721 = vmatpush3.bf16.msra.mxu1 %v720_v36 }
  0x4f   :  { %722 = vmatprep.subr.bf16.mxu1 %v866_v0  ;;  %703 = vmatpush3.bf16.msra.mxu0 %v702_v43 }
  0x50   :  { %704 = vmatprep.subr.bf16.mxu0 %v866_v0 }
  0x52   :  { %724 = vmatpush3.bf16.msra.mxu1 %v723_v39 }
  0x53   :  { %725 = vmatprep.subr.bf16.mxu1 %v866_v0  ;;  %706 = vmatpush3.bf16.msra.mxu0 %v705_v49 }
  0x54   :  { %707 = vmatprep.subr.bf16.mxu0 %v866_v0 }
  0x56   :  { %727 = vmatpush3.bf16.msra.mxu1 %v726_v45 }
  0x57   :  { %728 = vmatprep.subr.bf16.mxu1 %v866_v0  ;;  %709 = vmatpush3.bf16.msra.mxu0 %v708_v54 }
  0x58   :  { %734 = vmatprep.subr.bf16.mxu0 %v866_v0 }
  0x5a   :  { %730 = vmatpush3.bf16.msra.mxu1 %v729_v51 }
  0x5b   :  { %731 = vmatprep.subr.bf16.mxu1 %v866_v0 }
  0x5e   :  { %733 = vmatpush3.bf16.msra.mxu1 %v732_v57 }
 0x110   :  { %v128_v58 = vpop.f32.mrb[0].mxu1 }
 0x111   :  { %v567_v59 = vpop.f32.mrb[1].mxu1 }
 0x114   :  { %v201_v60 = vpop.f32.mrb[2].mxu1 }
 0x115   :  { %v202_v62 = vadd.f32 %v201_v60, %v128_v58  ;;  %v574_v63 = vpop.f32.mrb[3].mxu1 }
 0x117   :  { %v210_v4 = vadd.f32 %v501_v61, %v202_v62 }
 0x119   :  { %v211_v6 = vmax.f32 %v210_v4, 0.0 }
 0x11b   :  { %608 = vmatmul.mubr.f32.vlgmr.msra.gmra.mrb[0].mxu0 %v211_v6  ;;  %643 = vmatmul.mubr.f32.vlgmr.msra.gmra.mrb[4].mxu1 %v211_v6 }
 0x11c   :  { %736 = vmatpush3.bf16.msra.mxu0 %v735_v5  ;;  %677 = vmatprep.mubr.msk.f32.mxu0 %vm867_vm0, %v868_v1  ;;  %v314_v1 = vld [vmem:[#allocation7 + $0xf0] sm:$0xff] }
 0x11d   :  { %737 = vmatprep.subr.bf16.mxu0 %v866_v0  ;;  %v750_v20 = vpack.c.bf16 %v315_v19, %v314_v1 }
 0x120   :  { %739 = vmatpush3.bf16.msra.mxu0 %v738_v9 }
 0x121   :  { %740 = vmatprep.subr.bf16.mxu0 %v866_v0 }
 0x124   :  { %742 = vmatpush3.bf16.msra.mxu0 %v741_v12 }
 0x125   :  { %743 = vmatprep.subr.bf16.mxu0 %v866_v0 }
 0x128   :  { %745 = vmatpush3.bf16.msra.mxu0 %v744_v15 }
 0x129   :  { %746 = vmatprep.subr.bf16.mxu0 %v866_v0 }
 0x12c   :  { %748 = vmatpush3.bf16.msra.mxu0 %v747_v18 }
 0x12d   :  { %749 = vmatprep.subr.bf16.mxu0 %v866_v0 }
 0x130   :  { %751 = vmatpush3.bf16.msra.mxu0 %v750_v20 }
 0x131   :  { %752 = vmatprep.subr.bf16.mxu0 %v866_v0 }
 0x134   :  { %754 = vmatpush3.bf16.msra.mxu0 %v753_v23 }
 0x135   :  { %755 = vmatprep.subr.bf16.mxu0 %v866_v0 }
 0x138   :  { %757 = vmatpush3.bf16.msra.mxu0 %v756_v26 }
 0x1ee   :  { %v299_v28 = vpop.f32.mrb[0].mxu0  ;;  %v402_v29 = vpop.f32.mrb[4].mxu1 }
 0x1ef   :  { %v300_v30 = vadd.f32 %v502_v27, %v299_v28  ;;  %v609_v31 = vpop.f32.mrb[1].mxu0  ;;  %v644_v32 = vpop.f32.mrb[5].mxu1 }
 0x1f1   :  { %v303_v33 = vmax.f32 %v300_v30, 0.0 }
 0x1f3   :  { %678 = vmatmul.mubr.f32.vlgmr.msra.gmra.mrb[2].mxu0 %v303_v33 }
 0x2c6   :  { %v472_v34 = vpop.f32.mrb[2].mxu0 }
 0x2c7   :  { %v473_v36 = vadd.f32 %v472_v34, %v402_v29  ;;  %v679_v37 = vpop.f32.mrb[3].mxu0 }
 0x2c9   :  { %v481_v38 = vadd.f32 %v503_v35, %v473_v36 }
 0x2cb   :  { %482 = vst [vmem:[#allocation8] sm:$0xff] %v481_v38 }
 0x2cc   :  { %844 = shalt.err (!%p841_p0)
}
 0x2cd   :  { %s845_s25 = scalar_lea.hbm %s979_s3, 128 }
 0x2ce   :  { %p846_p1 = scmp.ne.s32.totalorder %s979_s3, %s845_s25  ;;  %p849_p2 = scmp.lt.u32.totalorder %s845_s25, %s979_s3 }
 0x2d0   :  { %p851_p3 = pnand %p849_p2, %p846_p1 }
 0x2d2   :  { %854 = shalt.err (!%p851_p3)
}
 0x2d3   :  { %492 = dma.vmem_to_hbm [thread:$0]  %s490_s21, 128, %s979_s3, [#allocation4]  }
 0x2d4   :  { %859 = dma.done.wait [#allocation4], 128  }
 0x2d5   :  { %860 = vsyncadd [#allocation4], 4294967168 }
 0x2d6   :  { %496 = vsyncpa [#allocation3], 1 }
 0x2d7   :  { %497 = vsyncpa [#allocation6], 1 }
 0x2d8   :  { %498 = vsyncpa [#allocation4], 1 }

</bundles_post_ra>
